<compile_context>
chip_gen: v7x
topology: tpu7x:2x2x1
jax: 0.10.0
libtpu: 0.0.40
codegen_flags: <defaults>
</compile_context>

<pallas_src>
from functools import partial
import math

import jax
import jax.numpy as jnp
import numpy as np
from jax import lax
from jax.experimental import pallas as pl
from jax.experimental.pallas import tpu as pltpu


def _round_up(n, m):
    return ((n + m - 1) // m) * m


def _token_tile(n, target=512):
    """Token tile (multiple of 8) + padded length.  Never falls back to one
    giant block: large n gets `target`, small n gets round_up(n, 8)."""
    tile = min(target, _round_up(n, 8))
    return tile, _round_up(n, tile)


# --------------------------- 1. fused QKV projection -------------------------

def _qkv_kernel(src_ref, pos_ref, wqk_ref, bqk_ref, wv_ref, bv_ref,
                q_ref, k_ref, v_ref, *, d_model, compute_dtype):
    x = src_ref[...]                                     # (T, D) f32
    qk_in = (x + pos_ref[...]).astype(compute_dtype)     # q = k = src + pos
    qk = jnp.dot(qk_in, wqk_ref[...],                    # one (D, 2D) matmul
                 preferred_element_type=jnp.float32) + bqk_ref[...]
    q_ref[...] = qk[:, :d_model].astype(q_ref.dtype)
    k_ref[...] = qk[:, d_model:].astype(k_ref.dtype)
    v_ref[...] = (jnp.dot(x.astype(compute_dtype), wv_ref[...],
                          preferred_element_type=jnp.float32)
                  + bv_ref[...]).astype(v_ref.dtype)


def qkv_projection(src, pos, wqk, bqk, wv, bv, *, compute_dtype):
    N, D = src.shape
    tile, n_pad = _token_tile(N)
    if n_pad != N:
        src = jnp.pad(src, ((0, n_pad - N), (0, 0)))
        pos = jnp.pad(pos, ((0, n_pad - N), (0, 0)))
    grid = (n_pad // tile,)
    tok = pl.BlockSpec((tile, D), lambda i: (i, 0))
    out = jax.ShapeDtypeStruct((n_pad, D), compute_dtype)
    q, k, v = pl.pallas_call(
        partial(_qkv_kernel, d_model=D, compute_dtype=compute_dtype),
        grid=grid,
        in_specs=[tok, tok,
                  pl.BlockSpec((D, 2 * D), lambda i: (0, 0)),   # resident weights
                  pl.BlockSpec((1, 2 * D), lambda i: (0, 0)),
                  pl.BlockSpec((D, D), lambda i: (0, 0)),
                  pl.BlockSpec((1, D), lambda i: (0, 0))],
        out_specs=[tok, tok, tok],
        out_shape=[out, out, out],
        compiler_params=pltpu.CompilerParams(dimension_semantics=("parallel",)),
    )(src, pos, wqk, bqk, wv, bv)
    if n_pad != N:
        q, k, v = q[:N], k[:N], v[:N]
    return q, k, v


# ------------------- 2. flash-style multi-head self-attention ----------------

def _attn_kernel(*refs, nheads, dh, s_real, tk, mask_kv,
                 has_full_bias, has_kp_bias, approx_recip, compute_dtype):
    it = iter(refs)
    q_ref, k_ref, v_ref = next(it), next(it), next(it)
    bias_full_ref = next(it) if has_full_bias else None
    bias_kp_ref = next(it) if has_kp_bias else None
    o_ref = next(it)
    m_sc, l_sc, acc_sc = next(it), next(it), next(it)

    ki = pl.program_id(2)
    nk = pl.num_programs(2)

    @pl.when(ki == 0)
    def _init():
        m_sc[...] = jnp.full(m_sc.shape, -jnp.inf, jnp.float32)
        l_sc[...] = jnp.zeros(l_sc.shape, jnp.float32)
        acc_sc[...] = jnp.zeros(acc_sc.shape, jnp.float32)

    # Additive bias shared across all heads (only built when masks were given).
    bias = None
    if has_full_bias:
        bias = bias_full_ref[...]                        # (TQ, TK) f32
    if has_kp_bias:
        kp = bias_kp_ref[...]                            # (1, TK) f32, bcast over q
        bias = kp if bias is None else bias + kp
    if mask_kv:                                          # mask keys >= real seq len
        col = ki * tk + lax.broadcasted_iota(jnp.int32, (1, tk), 1)
        kv_ok = col < s_real

    # Static head loop with static *lane* slices taken directly from the refs:
    # per head only (TQ,Dh)/(TK,Dh) slabs + one (TQ,TK) score tile are live,
    # so vreg pressure stays bounded.  The softmax scale is folded into Wq.
    for h in range(nheads):
        hs = slice(h * dh, (h + 1) * dh)
        s = lax.dot_general(q_ref[:, hs], k_ref[:, hs],
                            (((1,), (1,)), ((), ())),
                            preferred_element_type=jnp.float32)    # (TQ, TK)
        if bias is not None:
            s = s + bias
        if mask_kv:
            s = jnp.where(kv_ok, s, -1e30)
        m_prev = m_sc[h]                                           # (TQ, 1)
        m_new = jnp.maximum(m_prev, jnp.max(s, axis=-1, keepdims=True))
        alpha = jnp.exp(m_prev - m_new)
        p = jnp.exp(s - m_new)                                     # f32 (v5e: no bf16 EUP)
        l_sc[h] = alpha * l_sc[h] + jnp.sum(p, axis=-1, keepdims=True)
        acc_sc[:, hs] = alpha * acc_sc[:, hs] + jnp.dot(
            p.astype(compute_dtype), v_ref[:, hs],
            preferred_element_type=jnp.float32)
        m_sc[h] = m_new

    @pl.when(ki == nk - 1)
    def _finalize():
        for h in range(nheads):
            hs = slice(h * dh, (h + 1) * dh)
            acc_sc[:, hs] = acc_sc[:, hs] * pl.reciprocal(l_sc[h],
                                                          approx=approx_recip)
        o_ref[...] = acc_sc[...].astype(o_ref.dtype)     # one lane-dense store


def attention_core(q, k, v, *, nheads, bias_full=None, bias_kp=None,
                   compute_dtype, approx_recip):
    """q, k, v: (B, S, D); bias_full: (B, S, S); bias_kp: (B, 1, S)."""
    B, S, D = q.shape
    dh = D // nheads
    TQ = min(128, _round_up(S, 8))       # 128: vreg pressure + v7x 2-TC parallelism
    TK = TQ
    s_pad = _round_up(S, TQ)
    if s_pad != S:
        padS = ((0, 0), (0, s_pad - S), (0, 0))
        q, k, v = jnp.pad(q, padS), jnp.pad(k, padS), jnp.pad(v, padS)
        if bias_full is not None:
            bias_full = jnp.pad(bias_full, ((0, 0), (0, s_pad - S), (0, s_pad - S)))
        if bias_kp is not None:
            bias_kp = jnp.pad(bias_kp, ((0, 0), (0, 0), (0, s_pad - S)))

    grid = (B, s_pad // TQ, s_pad // TK)
    qo_spec = pl.BlockSpec((None, TQ, D), lambda b, qi, ki: (b, qi, 0))
    kv_spec = pl.BlockSpec((None, TK, D), lambda b, qi, ki: (b, ki, 0))
    in_specs = [qo_spec, kv_spec, kv_spec]
    args = [q, k, v]
    if bias_full is not None:
        in_specs.append(pl.BlockSpec((None, TQ, TK), lambda b, qi, ki: (b, qi, ki)))
        args.append(bias_full)
    if bias_kp is not None:
        in_specs.append(pl.BlockSpec((None, 1, TK), lambda b, qi, ki: (b, 0, ki)))
        args.append(bias_kp)

    out = pl.pallas_call(
        partial(_attn_kernel, nheads=nheads, dh=dh, s_real=S, tk=TK,
                mask_kv=(s_pad != S), has_full_bias=bias_full is not None,
                has_kp_bias=bias_kp is not None, approx_recip=approx_recip,
                compute_dtype=compute_dtype),
        grid=grid,
        in_specs=in_specs,
        out_specs=qo_spec,
        out_shape=jax.ShapeDtypeStruct((B, s_pad, D), compute_dtype),
        scratch_shapes=[pltpu.VMEM((nheads, TQ, 1), jnp.float32),   # running max
                        pltpu.VMEM((nheads, TQ, 1), jnp.float32),   # running sum
                        pltpu.VMEM((TQ, D), jnp.float32)],          # lane-dense acc
        compiler_params=pltpu.CompilerParams(
            dimension_semantics=("parallel", "parallel", "arbitrary")),
    )(*args)
    if s_pad != S:
        out = out[:, :S]
    return out


# --------- 3.+4. fused out-proj + res + LN1 + FFN + res + LN2 ----------------

def _tail_kernel(attn_ref, res_ref, wo_ref, bo_ref, g1_ref, be1_ref,
                 w1_ref, b1_ref, w2_ref, b2_ref, g2_ref, be2_ref, o_ref,
                 *, eps, compute_dtype):
    # out-proj + residual + LayerNorm1
    a = jnp.dot(attn_ref[...], wo_ref[...],
                preferred_element_type=jnp.float32) + bo_ref[...]
    z = res_ref[...] + a
    mu = jnp.mean(z, axis=-1, keepdims=True)
    var = jnp.mean((z - mu) ** 2, axis=-1, keepdims=True)      # biased, like torch
    x1 = (z - mu) * lax.rsqrt(var + eps) * g1_ref[...] + be1_ref[...]
    # FFN (linear1 + ReLU + linear2) + residual + LayerNorm2
    h = jnp.dot(x1.astype(compute_dtype), w1_ref[...],
                preferred_element_type=jnp.float32) + b1_ref[...]
    h = jnp.maximum(h, 0.0)
    f = jnp.dot(h.astype(compute_dtype), w2_ref[...],
                preferred_element_type=jnp.float32) + b2_ref[...]
    z2 = x1 + f
    mu2 = jnp.mean(z2, axis=-1, keepdims=True)
    var2 = jnp.mean((z2 - mu2) ** 2, axis=-1, keepdims=True)
    o_ref[...] = ((z2 - mu2) * lax.rsqrt(var2 + eps) * g2_ref[...]
                  + be2_ref[...]).astype(o_ref.dtype)


def fused_outproj_ffn(attn, res, wo, bo, g1, be1, w1, b1, w2, b2, g2, be2,
                      *, eps, compute_dtype):
    N, D = res.shape
    F = w1.shape[1]
    tile, n_pad = _token_tile(N)           # 512-class token tile (review)
    if n_pad != N:
        attn = jnp.pad(attn, ((0, n_pad - N), (0, 0)))
        res = jnp.pad(res, ((0, n_pad - N), (0, 0)))
    grid = (n_pad // tile,)
    tok = pl.BlockSpec((tile, D), lambda i: (i, 0))
    vecD = pl.BlockSpec((1, D), lambda i: (0, 0))
    # NOTE: resident weights are bf16 on the production path (~2.3 MB for
    # D=256/F=2048), so even double-buffered they fit v7x's 64 MiB VMEM.
    out = pl.pallas_call(
        partial(_tail_kernel, eps=eps, compute_dtype=compute_dtype),
        grid=grid,
        in_specs=[tok, tok,
                  pl.BlockSpec((D, D), lambda i: (0, 0)), vecD, vecD, vecD,
                  pl.BlockSpec((D, F), lambda i: (0, 0)),
                  pl.BlockSpec((1, F), lambda i: (0, 0)),
                  pl.BlockSpec((F, D), lambda i: (0, 0)),
                  vecD, vecD, vecD],
        out_specs=tok,
        out_shape=jax.ShapeDtypeStruct((n_pad, D), jnp.float32),
        compiler_params=pltpu.CompilerParams(
            dimension_semantics=("parallel",),
            vmem_limit_bytes=48 * 1024 * 1024),   # headroom beyond v5e's 16 MiB default
    )(attn, res, wo, bo, g1, be1, w1, b1, w2, b2, g2, be2)
    if n_pad != N:
        out = out[:N]
    return out


# ------------------------------ Forward glue ---------------------------------

def encoder_layer_forward(params, src, pos, src_mask=None,
                          src_key_padding_mask=None, eps=1e-5,
                          compute_dtype=jnp.bfloat16):
    """forward_post semantics; src, pos: [S, B, D] float32.

    compute_dtype=bf16 (default) is the production path: bf16 MXU operands and
    bf16 q/k/v/attn intermediates with f32 accumulation / softmax / LayerNorm.
    compute_dtype=f32 is the high-precision validation path.
    """
    S, B, D = src.shape
    H = params["nhead"]
    assert D % H == 0
    dh = D // H
    scale = 1.0 / math.sqrt(dh)
    f32 = jnp.float32
    approx_recip = jnp.dtype(compute_dtype) != jnp.dtype(jnp.float32)

    # ---- pre-transform parameters once, outside the kernels ----
    w_in, b_in = params["in_proj_w"], params["in_proj_b"]
    # softmax scale folded into Wq/bq; Wq|Wk fused into one (D, 2D) matmul.
    wqk = jnp.concatenate([w_in[:D] * scale, w_in[D:2 * D]], axis=0).T
    bqk = jnp.concatenate([b_in[:D] * scale, b_in[D:2 * D]])[None].astype(f32)
    wv = w_in[2 * D:].T
    bv = b_in[2 * D:][None].astype(f32)
    wo = params["out_proj_w"].T
    bo = params["out_proj_b"][None].astype(f32)
    w1 = params["lin1_w"].T
    b1 = params["lin1_b"][None].astype(f32)
    w2 = params["lin2_w"].T
    b2 = params["lin2_b"][None].astype(f32)
    g1, be1 = params["ln1_g"][None].astype(f32), params["ln1_b"][None].astype(f32)
    g2, be2 = params["ln2_g"][None].astype(f32), params["ln2_b"][None].astype(f32)
    # MXU operands pre-cast once (no in-kernel weight casts; halves footprint).
    wqk, wv, wo, w1, w2 = (w.astype(compute_dtype)
                           for w in (wqk, wv, wo, w1, w2))

    # ---- (S, B, D) -> (B, S, D): batch-major tokens, lane-dense D everywhere ----
    src_b = jnp.transpose(src, (1, 0, 2)).astype(f32)
    pos_b = jnp.transpose(pos, (1, 0, 2)).astype(f32)
    N = B * S
    src_flat = src_b.reshape(N, D)
    pos_flat = pos_b.reshape(N, D)

    # ---- 1. fused QKV projection ----
    q, k, v = qkv_projection(src_flat, pos_flat, wqk, bqk, wv, bv,
                             compute_dtype=compute_dtype)

    # ---- optional attention bias (never a (B*H, S, S) tensor) ----
    bias_full = None
    bias_kp = None
    if src_mask is not None:
        sm = src_mask
        if sm.dtype == jnp.bool_:
            sm = jnp.where(sm, -1e30, 0.0)
        sm = sm.astype(f32)
        if sm.ndim == 2:
            sm = jnp.broadcast_to(sm[None], (B, S, S))
        # TODO(synk): per-head (B*H, S, S) attn_mask not supported (DETR passes None).
        bias_full = sm
    if src_key_padding_mask is not None:
        kp = jnp.where(src_key_padding_mask, -1e30, 0.0).astype(f32)   # (B, S)
        bias_kp = kp[:, None, :]                                       # (B, 1, S)

    # ---- 2. flash-style multi-head self-attention ----
    attn = attention_core(q.reshape(B, S, D), k.reshape(B, S, D),
                          v.reshape(B, S, D), nheads=H,
                          bias_full=bias_full, bias_kp=bias_kp,
                          compute_dtype=compute_dtype,
                          approx_recip=approx_recip)                   # (B, S, D)

    # ---- 3.+4. out-proj + residual + LN1 + FFN + residual + LN2 (one kernel) ----
    out_flat = fused_outproj_ffn(attn.reshape(N, D), src_flat,
                                 wo, bo, g1, be1, w1, b1, w2, b2, g2, be2,
                                 eps=eps, compute_dtype=compute_dtype)
    return jnp.transpose(out_flat.reshape(B, S, D), (1, 0, 2))


# ------------------------- Pure-JAX reference check --------------------------

def _reference(params, src, pos):
    S, B, D = src.shape
    H = params["nhead"]
    Dh = D // H
    scale = 1.0 / float(np.sqrt(Dh))
    qk = (src + pos).reshape(S * B, D)
    xv = src.reshape(S * B, D)
    W = params["in_proj_w"]
    b = params["in_proj_b"]
    q = (qk @ W[:D].T + b[:D]).reshape(S, B * H, Dh).transpose(1, 0, 2)
    k = (qk @ W[D:2 * D].T + b[D:2 * D]).reshape(S, B * H, Dh).transpose(1, 0, 2)
    v = (xv @ W[2 * D:].T + b[2 * D:]).reshape(S, B * H, Dh).transpose(1, 0, 2)
    s = jnp.einsum("bqd,bkd->bqk", q, k) * scale
    p = jax.nn.softmax(s, axis=-1)
    a = jnp.einsum("bqk,bkd->bqd", p, v).transpose(1, 0, 2).reshape(S * B, D)
    a = a @ params["out_proj_w"].T + params["out_proj_b"]

    def ln(z, g, bb):
        mu = z.mean(-1, keepdims=True)
        var = ((z - mu) ** 2).mean(-1, keepdims=True)
        return (z - mu) / jnp.sqrt(var + 1e-5) * g + bb

    x = ln(xv + a, params["ln1_g"], params["ln1_b"])
    h = jnp.maximum(x @ params["lin1_w"].T + params["lin1_b"], 0.0)
    f = h @ params["lin2_w"].T + params["lin2_b"]
    x = ln(x + f, params["ln2_g"], params["ln2_b"])
    return x.reshape(S, B, D)


# ---------------------------------- Main -------------------------------------

if __name__ == "__main__":
    # S=13 deliberately exercises both the sequence-padding + in-kernel kv-mask
    # path (S -> 16) and the token-padding path (B*S=26 -> 32).
    S, B, D, H, F = 13, 2, 32, 4, 64
    key = jax.random.PRNGKey(0)
    ks = jax.random.split(key, 10)

    params = {
        "nhead": H,
        "in_proj_w": 0.05 * jax.random.normal(ks[0], (3 * D, D), jnp.float32),
        "in_proj_b": 0.05 * jax.random.normal(ks[1], (3 * D,), jnp.float32),
        "out_proj_w": 0.05 * jax.random.normal(ks[2], (D, D), jnp.float32),
        "out_proj_b": 0.05 * jax.random.normal(ks[3], (D,), jnp.float32),
        "lin1_w": 0.05 * jax.random.normal(ks[4], (F, D), jnp.float32),
        "lin1_b": 0.05 * jax.random.normal(ks[5], (F,), jnp.float32),
        "lin2_w": 0.05 * jax.random.normal(ks[6], (D, F), jnp.float32),
        "lin2_b": 0.05 * jax.random.normal(ks[7], (D,), jnp.float32),
        "ln1_g": jnp.ones((D,), jnp.float32),
        "ln1_b": jnp.zeros((D,), jnp.float32),
        "ln2_g": jnp.ones((D,), jnp.float32),
        "ln2_b": jnp.zeros((D,), jnp.float32),
    }

    src = jax.random.normal(ks[8], (S, B, D), jnp.float32)
    pos = jax.random.normal(ks[9], (S, B, D), jnp.float32)

    ref = _reference(params, src, pos)

    # f32 validation path (exact reciprocal, f32 MXU operands): tight check.
    out_f32 = jax.block_until_ready(
        encoder_layer_forward(params, src, pos, compute_dtype=jnp.float32))
    np.testing.assert_allclose(np.asarray(out_f32), np.asarray(ref),
                               rtol=2e-4, atol=2e-4)

    # bf16 production path (bf16 MXU operands/intermediates, approx reciprocal).
    out_bf16 = jax.block_until_ready(
        encoder_layer_forward(params, src, pos, compute_dtype=jnp.bfloat16))
    err = float(jnp.max(jnp.abs(out_bf16 - ref)))
    assert np.isfinite(np.asarray(out_bf16)).all() and err < 0.25, err

    print("KERNEL_OK")
</pallas_src>

<mosaic_0001>
module attributes {stable_mosaic.version = 11 : i64} {
  func.func @_qkv_kernel(%arg0: i32, %arg1: memref<32x32xf32, #tpu.memory_space<vmem>>, %arg2: memref<32x32xf32, #tpu.memory_space<vmem>>, %arg3: memref<32x64xf32, #tpu.memory_space<vmem>>, %arg4: memref<1x64xf32, #tpu.memory_space<vmem>>, %arg5: memref<32x32xf32, #tpu.memory_space<vmem>>, %arg6: memref<1x32xf32, #tpu.memory_space<vmem>>, %arg7: memref<32x32xf32, #tpu.memory_space<vmem>>, %arg8: memref<32x32xf32, #tpu.memory_space<vmem>>, %arg9: memref<32x32xf32, #tpu.memory_space<vmem>>) attributes {dimension_semantics = [#tpu.dimension_semantics<parallel>], iteration_bounds = array<i64: 1>, scalar_prefetch = 0 : i64, scratch_operands = 0 : i64, tpu.core_type = #tpu.core_type<tc>, window_params = [{transform_indices = @transform_0, window_bounds = array<i64: 32, 32>}, {transform_indices = @transform_1, window_bounds = array<i64: 32, 32>}, {pipeline_mode = #tpu.pipeline_mode<synchronous>, transform_indices = @transform_2, window_bounds = array<i64: 32, 64>}, {pipeline_mode = #tpu.pipeline_mode<synchronous>, transform_indices = @transform_3, window_bounds = array<i64: 1, 64>}, {pipeline_mode = #tpu.pipeline_mode<synchronous>, transform_indices = @transform_4, window_bounds = array<i64: 32, 32>}, {pipeline_mode = #tpu.pipeline_mode<synchronous>, transform_indices = @transform_5, window_bounds = array<i64: 1, 32>}, {transform_indices = @transform_6, window_bounds = array<i64: 32, 32>}, {transform_indices = @transform_7, window_bounds = array<i64: 32, 32>}, {transform_indices = @transform_8, window_bounds = array<i64: 32, 32>}]} {
    %c0 = arith.constant 0 : index
    %c0_0 = arith.constant 0 : index
    %0 = vector.load %arg1[%c0, %c0_0] : memref<32x32xf32, #tpu.memory_space<vmem>>, vector<32x32xf32>
    %c0_1 = arith.constant 0 : index
    %c0_2 = arith.constant 0 : index
    %1 = vector.load %arg2[%c0_1, %c0_2] : memref<32x32xf32, #tpu.memory_space<vmem>>, vector<32x32xf32>
    %2 = arith.addf %0, %1 : vector<32x32xf32>
    %c0_3 = arith.constant 0 : index
    %c0_4 = arith.constant 0 : index
    %3 = vector.load %arg3[%c0_3, %c0_4] : memref<32x64xf32, #tpu.memory_space<vmem>>, vector<32x64xf32>
    %cst = arith.constant dense<0.000000e+00> : vector<32x64xf32>
    %4 = tpu.matmul %2, %3, %cst {dimension_numbers = #tpu.dot_dimension_numbers<[1], [0], [0], [1], [0, 0, 1, 1], [], []>} : vector<32x32xf32>, vector<32x64xf32>, vector<32x64xf32> -> vector<32x64xf32>
    %c0_5 = arith.constant 0 : index
    %c0_6 = arith.constant 0 : index
    %5 = vector.load %arg4[%c0_5, %c0_6] : memref<1x64xf32, #tpu.memory_space<vmem>>, vector<1x64xf32>
    %6 = vector.broadcast %5 : vector<1x64xf32> to vector<32x64xf32>
    %7 = arith.addf %4, %6 : vector<32x64xf32>
    %8 = vector.extract_strided_slice %7 {offsets = [0, 0], sizes = [32, 32], strides = [1, 1]} : vector<32x64xf32> to vector<32x32xf32>
    %c0_7 = arith.constant 0 : index
    %c0_8 = arith.constant 0 : index
    %9 = vector.load %arg7[%c0_7, %c0_8] : memref<32x32xf32, #tpu.memory_space<vmem>>, vector<32x32xf32>
    tpu.vector_store %arg7[%c0_7, %c0_8], %8 {strides = array<i32>} : memref<32x32xf32, #tpu.memory_space<vmem>>, vector<32x32xf32>,
    %10 = vector.extract_strided_slice %7 {offsets = [0, 32], sizes = [32, 32], strides = [1, 1]} : vector<32x64xf32> to vector<32x32xf32>
    %c0_9 = arith.constant 0 : index
    %c0_10 = arith.constant 0 : index
    %11 = vector.load %arg8[%c0_9, %c0_10] : memref<32x32xf32, #tpu.memory_space<vmem>>, vector<32x32xf32>
    tpu.vector_store %arg8[%c0_9, %c0_10], %10 {strides = array<i32>} : memref<32x32xf32, #tpu.memory_space<vmem>>, vector<32x32xf32>,
    %c0_11 = arith.constant 0 : index
    %c0_12 = arith.constant 0 : index
    %12 = vector.load %arg5[%c0_11, %c0_12] : memref<32x32xf32, #tpu.memory_space<vmem>>, vector<32x32xf32>
    %cst_13 = arith.constant dense<0.000000e+00> : vector<32x32xf32>
    %13 = tpu.matmul %0, %12, %cst_13 {dimension_numbers = #tpu.dot_dimension_numbers<[1], [0], [0], [1], [0, 0, 1, 1], [], []>} : vector<32x32xf32>, vector<32x32xf32>, vector<32x32xf32> -> vector<32x32xf32>
    %c0_14 = arith.constant 0 : index
    %c0_15 = arith.constant 0 : index
    %14 = vector.load %arg6[%c0_14, %c0_15] : memref<1x32xf32, #tpu.memory_space<vmem>>, vector<1x32xf32>
    %15 = vector.broadcast %14 : vector<1x32xf32> to vector<32x32xf32>
    %16 = arith.addf %13, %15 : vector<32x32xf32>
    %c0_16 = arith.constant 0 : index
    %c0_17 = arith.constant 0 : index
    %17 = vector.load %arg9[%c0_16, %c0_17] : memref<32x32xf32, #tpu.memory_space<vmem>>, vector<32x32xf32>
    tpu.vector_store %arg9[%c0_16, %c0_17], %16 {strides = array<i32>} : memref<32x32xf32, #tpu.memory_space<vmem>>, vector<32x32xf32>,
    return
  }
  func.func @transform_0(%arg0: i32) -> (i32, i32) {
    %c0_i32 = arith.constant 0 : i32
    %c0_i32_0 = arith.constant 0 : i32
    return %arg0, %c0_i32 : i32, i32
  }
  func.func @transform_1(%arg0: i32) -> (i32, i32) {
    %c0_i32 = arith.constant 0 : i32
    %c0_i32_0 = arith.constant 0 : i32
    return %arg0, %c0_i32 : i32, i32
  }
  func.func @transform_2(%arg0: i32) -> (i32, i32) {
    %c0_i32 = arith.constant 0 : i32
    %c0_i32_0 = arith.constant 0 : i32
    %c0_i32_1 = arith.constant 0 : i32
    return %c0_i32, %c0_i32_0 : i32, i32
  }
  func.func @transform_3(%arg0: i32) -> (i32, i32) {
    %c0_i32 = arith.constant 0 : i32
    %c0_i32_0 = arith.constant 0 : i32
    %c0_i32_1 = arith.constant 0 : i32
    return %c0_i32, %c0_i32_0 : i32, i32
  }
  func.func @transform_4(%arg0: i32) -> (i32, i32) {
    %c0_i32 = arith.constant 0 : i32
    %c0_i32_0 = arith.constant 0 : i32
    %c0_i32_1 = arith.constant 0 : i32
    return %c0_i32, %c0_i32_0 : i32, i32
  }
  func.func @transform_5(%arg0: i32) -> (i32, i32) {
    %c0_i32 = arith.constant 0 : i32
    %c0_i32_0 = arith.constant 0 : i32
    %c0_i32_1 = arith.constant 0 : i32
    return %c0_i32, %c0_i32_0 : i32, i32
  }
  func.func @transform_6(%arg0: i32) -> (i32, i32) {
    %c0_i32 = arith.constant 0 : i32
    %c0_i32_0 = arith.constant 0 : i32
    return %arg0, %c0_i32 : i32, i32
  }
  func.func @transform_7(%arg0: i32) -> (i32, i32) {
    %c0_i32 = arith.constant 0 : i32
    %c0_i32_0 = arith.constant 0 : i32
    return %arg0, %c0_i32 : i32, i32
  }
  func.func @transform_8(%arg0: i32) -> (i32, i32) {
    %c0_i32 = arith.constant 0 : i32
    %c0_i32_0 = arith.constant 0 : i32
    return %arg0, %c0_i32 : i32, i32
  }
}

</mosaic_0001>

<bundles_post_ra>
// kernel: tpu_custom_call.1
= control target key start
LH: loop header
LB: loop body
LE: loop exit
PB: predicated region body
PF: predicated region fallthrough
CT: control target
= control target key end

     0   :  { %14 = vsyncpa [#allocation3], 0  ;;  %s845_s0 = inlined_call_operand.hbm [shape: f32[32,32], index: 0, kind: input, shape index: {}]   ;;  %s846_s1 = inlined_call_operand.hbm [shape: f32[32,32], index: 1, kind: input, shape index: {}]   ;;  %s847_s2 = inlined_call_operand.hbm [shape: f32[32,64], index: 2, kind: input, shape index: {}]   ;;  %s848_s3 = inlined_call_operand.vmem [shape: f32[1,64], index: 3, kind: input, shape index: {}]   ;;  %s849_s4 = inlined_call_operand.hbm [shape: f32[32,32], index: 4, kind: input, shape index: {}]   ;;  %s850_s5 = inlined_call_operand.vmem [shape: f32[1,32], index: 5, kind: input, shape index: {}]   ;;  %s851_s6 = inlined_call_operand.hbm [shape: f32[32,32], index: 6, kind: output, shape index: {0}]   ;;  %s852_s7 = inlined_call_operand.hbm [shape: f32[32,32], index: 7, kind: output, shape index: {1}]   ;;  %s853_s8 = inlined_call_operand.hbm [shape: f32[32,32], index: 8, kind: output, shape index: {2}]  }
   0x1   :  { %15 = vsyncpa [#allocation6], 0 }
   0x2   :  { %16 = vsyncpa [#allocation9], 0 }
   0x3   :  { %17 = vsyncpa [#allocation4], 0 }
   0x4   :  { %18 = vsyncpa [#allocation12], 0  ;;  %s634_s27 = smov [#allocation5]   ;;  %s635_s29 = smov [#allocation2]  }
   0x5   :  { %s36_s28 = sshll.u32 %s634_s27, 4  ;;  %s24_s30 = sshll.u32 %s635_s29, 4  ;;  %s37_s28 = int_to_ptr.vmem [resolvable:$true] %s36_s28  ;;  %s689_s30 = int_to_ptr.vmem [resolvable:$true] %s24_s30 }
   0x6   :  { %s470_s11 = scalar_lea.hbm %s846_s1, 512 }
   0x7   :  { %p471_p0 = scmp.ne.s32.totalorder %s846_s1, %s470_s11  ;;  %p474_p1 = scmp.lt.u32.totalorder %s470_s11, %s846_s1 }
   0x9   :  { %p476_p2 = pnand %p474_p1, %p471_p0 }
   0xb   :  { %479 = shalt.err (!%p476_p2)
}
   0xc   :  { %s480_s16 = scalar_lea.vmem %s37_s28, 512  ;;  %p485_p4 = scmp.lt.s32.totalorder %s37_s28, %s37_s28 }
   0xd   :  { %p481_p3 = scmp.ne.s32.totalorder %s37_s28, %s480_s16  ;;  %p486_p5 = scmp.lt.s32.totalorder %s480_s16, %s480_s16 }
   0xf   :  { %p487_p6 = por %p486_p5, %p485_p4 }
  0x11   :  { %p488_p7 = pnand %p487_p6, %p481_p3 }
  0x13   :  { %491 = shalt.err (!%p488_p7)
}
  0x14   :  { %s636_s17 = smov 128   ;;  %s637_s18 = smov 8  }
  0x15   :  { %42 = dma.hbm_to_vmem [thread:$0]  %s846_s1, 512, %s37_s28, [#allocation6], %s636_s17, %s636_s17, %s637_s18  }
  0x16   :  { %s492_s23 = scalar_lea.hbm %s845_s0, 512 }
  0x17   :  { %p493_p8 = scmp.ne.s32.totalorder %s845_s0, %s492_s23  ;;  %p496_p9 = scmp.lt.u32.totalorder %s492_s23, %s845_s0 }
  0x19   :  { %p498_p10 = pnand %p496_p9, %p493_p8 }
  0x1b   :  { %501 = shalt.err (!%p498_p10)
}
  0x1c   :  { %s502_s29 = scalar_lea.vmem %s689_s30, 512  ;;  %p507_p12 = scmp.lt.s32.totalorder %s689_s30, %s689_s30 }
  0x1d   :  { %p503_p11 = scmp.ne.s32.totalorder %s689_s30, %s502_s29  ;;  %p508_p13 = scmp.lt.s32.totalorder %s502_s29, %s502_s29 }
  0x1f   :  { %p509_p0 = por %p508_p13, %p507_p12 }
  0x21   :  { %p510_p1 = pnand %p509_p0, %p503_p11 }
  0x23   :  { %513 = shalt.err (!%p510_p1)
}
  0x24   :  { %30 = dma.hbm_to_vmem [thread:$0]  %s845_s0, 512, %s689_s30, [#allocation3], %s636_s17, %s636_s17, %s637_s18  }
  0x25   :  { %s638_s9 = smov [#allocation7]   ;;  %s639_s11 = smov [#allocation8]  }
  0x26   :  { %s48_s10 = sshll.u32 %s638_s9, 4  ;;  %s62_s12 = sshll.u32 %s639_s11, 4  ;;  %s49_s10 = int_to_ptr.vmem [resolvable:$true] %s48_s10  ;;  %s726_s12 = int_to_ptr.vmem [resolvable:$true] %s62_s12 }
  0x27   :  { %s514_s15 = scalar_lea.hbm %s847_s2, 512 }
  0x28   :  { %p515_p2 = scmp.ne.s32.totalorder %s847_s2, %s514_s15  ;;  %p518_p3 = scmp.lt.u32.totalorder %s514_s15, %s847_s2 }
  0x2a   :  { %p520_p4 = pnand %p518_p3, %p515_p2 }
  0x2c   :  { %523 = shalt.err (!%p520_p4)
}
  0x2d   :  { %s524_s0 = scalar_lea.vmem %s49_s10, 512  ;;  %p529_p6 = scmp.lt.s32.totalorder %s49_s10, %s49_s10 }
  0x2e   :  { %p525_p5 = scmp.ne.s32.totalorder %s49_s10, %s524_s0  ;;  %p530_p7 = scmp.lt.s32.totalorder %s524_s0, %s524_s0 }
  0x30   :  { %p531_p8 = por %p530_p7, %p529_p6 }
  0x32   :  { %p532_p9 = pnand %p531_p8, %p525_p5 }
  0x34   :  { %535 = shalt.err (!%p532_p9)
}
  0x35   :  { %54 = dma.hbm_to_vmem [thread:$0]  %s847_s2, 512, %s49_s10, [#allocation6], %s636_s17, %s636_s17, %s637_s18  }
  0x36   :  { %s536_s25 = scalar_lea.hbm %s849_s4, 512 }
  0x37   :  { %p537_p10 = scmp.ne.s32.totalorder %s849_s4, %s536_s25  ;;  %p540_p11 = scmp.lt.u32.totalorder %s536_s25, %s849_s4 }
  0x39   :  { %p542_p12 = pnand %p540_p11, %p537_p10 }
  0x3b   :  { %545 = shalt.err (!%p542_p12)
}
  0x3c   :  { %s546_s28 = scalar_lea.vmem %s726_s12, 512  ;;  %p551_p0 = scmp.lt.s32.totalorder %s726_s12, %s726_s12 }
  0x3d   :  { %p547_p13 = scmp.ne.s32.totalorder %s726_s12, %s546_s28  ;;  %p552_p1 = scmp.lt.s32.totalorder %s546_s28, %s546_s28 }
  0x3f   :  { %p553_p2 = por %p552_p1, %p551_p0 }
  0x41   :  { %p554_p3 = pnand %p553_p2, %p547_p13 }
  0x43   :  { %557 = shalt.err (!%p554_p3)
}
  0x44   :  { %68 = dma.hbm_to_vmem [thread:$0]  %s849_s4, 512, %s726_s12, [#allocation9], %s636_s17, %s636_s17, %s637_s18  }
  0x45   :  { %624 = dma.done.wait [#allocation3], 512  }
  0x46   :  { %625 = vsyncadd [#allocation3], 4294966784 }
  0x47   :  { %626 = dma.done.wait [#allocation6], 1024  }
  0x48   :  { %627 = vsyncadd [#allocation6], 4294966272 }
  0x49   :  { %628 = dma.done.wait [#allocation9], 512  }
  0x4a   :  { %629 = vsyncadd [#allocation9], 4294966784  ;;  %v95_v0 = vld [vmem:[#allocation7] sm:$0xff]  ;;  %v96_v1 = vld [vmem:[#allocation7 + $0x8] sm:$0xff]  ;;  %vm106_vm0 = vcmask 261120   ;;  %s640_s13 = smov [#allocation10]  }
  0x4b   :  { %v97_v2 = vld [vmem:[#allocation7 + $0x10] sm:$0xff]  ;;  %v444_v3 = vpack.c.bf16 %v96_v1, %v95_v0  ;;  %v98_v4 = vld [vmem:[#allocation7 + $0x18] sm:$0xff]  ;;  %v83_v5 = vld [vmem:[#allocation2] sm:$0xff]  ;;  %s345_s14 = sshll.u32 %s640_s13, 4  ;;  %s641_s15 = smov 96   ;;  %s346_s14 = int_to_ptr.vmem [resolvable:$true] %s345_s14 }
  0x4c   :  { %v87_v6 = vld [vmem:[#allocation5] sm:$0xff]  ;;  %v448_v7 = vpack.c.bf16 %v98_v4, %v97_v2  ;;  %438 = vmatprep.mubr.msk.f32.mxu1 %vm106_vm0, %v83_v5  ;;  %v84_v9 = vld [vmem:[#allocation2 + $0x8] sm:$0xff]  ;;  %v230_v13 = vld [vmem:[#allocation8 + $0x10] sm:$0xff]  ;;  %p563_p5 = scmp.lt.s32.totalorder %s346_s14, %s346_s14 }
  0x4d   :  { %v91_v8 = vadd.f32 %v87_v6, %v83_v5  ;;  %445 = vmatprep.subr.bf16.mxu0 %v444_v3  ;;  %v88_v10 = vld [vmem:[#allocation5 + $0x8] sm:$0xff]  ;;  %v228_v11 = vld [vmem:[#allocation8] sm:$0xff]  ;;  %v85_v14 = vld [vmem:[#allocation2 + $0x10] sm:$0xff] }
  0x4e   :  { %447 = vmatpush3.bf16.msra.mxu0 %v444_v3  ;;  %v229_v12 = vld [vmem:[#allocation8 + $0x8] sm:$0xff]  ;;  %v89_v15 = vld [vmem:[#allocation5 + $0x10] sm:$0xff]  ;;  %v231_v17 = vld [vmem:[#allocation8 + $0x18] sm:$0xff]  ;;  %v92_v19 = vadd.f32 %v88_v10, %v84_v9 }
  0x4f   :  { %424 = vmatprep.mubr.msk.f32.mxu0 %vm106_vm0, %v91_v8  ;;  %449 = vmatprep.subr.bf16.mxu0 %v448_v7  ;;  %v452_v16 = vpack.c.bf16 %v229_v12, %v228_v11  ;;  %v456_v18 = vpack.c.bf16 %v231_v17, %v230_v13  ;;  %v93_v20 = vadd.f32 %v89_v15, %v85_v14  ;;  %v86_v21 = vld [vmem:[#allocation2 + $0x18] sm:$0xff]  ;;  %v390_v24 = vld [vmem:[%s848_s3] ss:$0 sm:$0xff]  ;;  %s558_s3 = scalar_lea.vmem %s346_s14, 512 }
  0x50   :  { %v90_v22 = vld [vmem:[#allocation5 + $0x18] sm:$0xff]  ;;  %v395_v29 = vld [vmem:[%s850_s5] ss:$0 sm:$0xff]  ;;  %p559_p4 = scmp.ne.s32.totalorder %s346_s14, %s558_s3  ;;  %p564_p6 = scmp.lt.s32.totalorder %s558_s3, %s558_s3 }
  0x51   :  { %453 = vmatprep.subr.bf16.mxu1 %v452_v16  ;;  %v94_v23 = vadd.f32 %v90_v22, %v86_v21 }
  0x52   :  { %451 = vmatpush3.bf16.msra.mxu0 %v448_v7  ;;  %455 = vmatpush3.bf16.msra.mxu1 %v452_v16  ;;  %p565_p7 = por %p564_p6, %p563_p5 }
  0x53   :  { %457 = vmatprep.subr.bf16.mxu1 %v456_v18 }
  0x54   :  { %p566_p8 = pnand %p565_p7, %p559_p4 }
  0x55   :  { %425 = vmatmul.mubr.msk.f32.vlgmr.msra.gmra.mrb[0].mxu0 %vm106_vm0, %v92_v19 }
  0x56   :  { %427 = vmatprep.mubr.msk.f32.mxu0 %vm106_vm0, %v93_v20  ;;  %459 = vmatpush3.bf16.msra.mxu1 %v456_v18 }
  0x59   :  { %428 = vmatmul.mubr.msk.f32.gmra.mrb[2].mxu0 %vm106_vm0, %v94_v23  ;;  %439 = vmatmul.mubr.msk.f32.vlgmr.msra.gmra.mrb[0].mxu1 %vm106_vm0, %v84_v9 }
  0x5a   :  { %441 = vmatprep.mubr.msk.f32.mxu1 %vm106_vm0, %v85_v14 }
  0x5d   :  { %442 = vmatmul.mubr.msk.f32.gmra.mrb[2].mxu1 %vm106_vm0, %v86_v21 }
 0x128   :  { %v426_v25 = vpop.f32.mrb[0].mxu0 }
 0x129   :  { %v191_v26 = vadd.f32 %v426_v25, %v390_v24  ;;  %v185_v27 = vpop.f32.mrb[1].mxu0 }
 0x12a   :  { %v186_v28 = vadd.f32 %v390_v24, %v185_v27 }
 0x12b   :  { %205 = vst.msk [vmem:[#allocation10 + $0x8] sm:$0xff] %vm106_vm0, %v191_v26 }
 0x12c   :  { %204 = vst.msk [vmem:[#allocation10] sm:$0xff] %vm106_vm0, %v186_v28  ;;  %v429_v30 = vpop.f32.mrb[2].mxu0  ;;  %212 = vrot.lane.b32.xlu0 %v186_v28, %s641_s15  ;;  %v440_v31 = vpop.f32.mrb[0].mxu1 }
 0x12d   :  { %v201_v32 = vadd.f32 %v429_v30, %v390_v24  ;;  %v195_v33 = vpop.f32.mrb[3].mxu0  ;;  %v323_v34 = vadd.f32 %v440_v31, %v395_v29  ;;  %v317_v35 = vpop.f32.mrb[1].mxu1 }
 0x12e   :  { %v196_v36 = vadd.f32 %v390_v24, %v195_v33  ;;  %v318_v37 = vadd.f32 %v395_v29, %v317_v35 }
 0x12f   :  { %207 = vst.msk [vmem:[#allocation10 + $0x18] sm:$0xff] %vm106_vm0, %v201_v32  ;;  %337 = vst.msk [vmem:[#allocation13 + $0x8] sm:$0xff] %vm106_vm0, %v323_v34 }
 0x130   :  { %206 = vst.msk [vmem:[#allocation10 + $0x10] sm:$0xff] %vm106_vm0, %v196_v36  ;;  %216 = vrot.lane.b32.xlu1 %v196_v36, %s641_s15  ;;  %214 = vrot.lane.b32.xlu0 %v191_v26, %s641_s15  ;;  %336 = vst.msk [vmem:[#allocation13] sm:$0xff] %vm106_vm0, %v318_v37  ;;  %v443_v38 = vpop.f32.mrb[2].mxu1 }
 0x131   :  { %v333_v39 = vadd.f32 %v443_v38, %v395_v29  ;;  %v327_v40 = vpop.f32.mrb[3].mxu1 }
 0x132   :  { %569 = shalt.err (!%p566_p8)
}
 0x133   :  { %s570_s19 = scalar_lea.hbm %s851_s6, 512 }
 0x134   :  { %p571_p9 = scmp.ne.s32.totalorder %s851_s6, %s570_s19  ;;  %p574_p10 = scmp.lt.u32.totalorder %s570_s19, %s851_s6 }
 0x136   :  { %p576_p11 = pnand %p574_p10, %p571_p9 }
 0x138   :  { %579 = shalt.err (!%p576_p11)
}
 0x139   :  { %351 = dma.vmem_to_hbm [thread:$0]  %s346_s14, 512, %s851_s6, [#allocation4], %s636_s17, %s636_s17, %s637_s18   ;;  %v328_v41 = vadd.f32 %v395_v29, %v327_v40  ;;  %339 = vst.msk [vmem:[#allocation13 + $0x18] sm:$0xff] %vm106_vm0, %v333_v39 }
 0x13a   :  { %218 = vrot.lane.b32.xlu1 %v201_v32, %s641_s15  ;;  %s642_s24 = smov [#allocation11]   ;;  %s643_s26 = smov [#allocation13]  }
 0x13b   :  { %338 = vst.msk [vmem:[#allocation13 + $0x10] sm:$0xff] %vm106_vm0, %v328_v41  ;;  %s357_s25 = sshll.u32 %s642_s24, 4  ;;  %s369_s6 = sshll.u32 %s643_s26, 4  ;;  %s358_s25 = int_to_ptr.vmem [resolvable:$true] %s357_s25  ;;  %s807_s6 = int_to_ptr.vmem [resolvable:$true] %s369_s6 }
 0x13c   :  { %s580_s27 = scalar_lea.vmem %s358_s25, 512  ;;  %p585_p13 = scmp.lt.s32.totalorder %s358_s25, %s358_s25 }
 0x13d   :  { %p581_p12 = scmp.ne.s32.totalorder %s358_s25, %s580_s27  ;;  %p586_p0 = scmp.lt.s32.totalorder %s580_s27, %s580_s27 }
 0x13f   :  { %p587_p1 = por %p586_p0, %p585_p13 }
 0x141   :  { %p588_p2 = pnand %p587_p1, %p581_p12 }
 0x19e   :  { %v213_v42 = vpop.permute.xlu0 %212 }
 0x19f   :  { %224 = vst.msk [vmem:[#allocation11] sm:$0xff] %vm106_vm0, %v213_v42 }
 0x1a2   :  { %v217_v43 = vpop.permute.xlu1 %216  ;;  %v215_v44 = vpop.permute.xlu0 %214 }
 0x1a3   :  { %226 = vst.msk [vmem:[#allocation11 + $0x10] sm:$0xff] %vm106_vm0, %v217_v43  ;;  %225 = vst.msk [vmem:[#allocation11 + $0x8] sm:$0xff] %vm106_vm0, %v215_v44 }
 0x1ac   :  { %v219_v45 = vpop.permute.xlu1 %218 }
 0x1ad   :  { %227 = vst.msk [vmem:[#allocation11 + $0x18] sm:$0xff] %vm106_vm0, %v219_v45 }
 0x1ae   :  { %591 = shalt.err (!%p588_p2)
}
 0x1af   :  { %s592_s28 = scalar_lea.hbm %s852_s7, 512 }
 0x1b0   :  { %p593_p3 = scmp.ne.s32.totalorder %s852_s7, %s592_s28  ;;  %p596_p4 = scmp.lt.u32.totalorder %s592_s28, %s852_s7 }
 0x1b2   :  { %p598_p5 = pnand %p596_p4, %p593_p3 }
 0x1b4   :  { %601 = shalt.err (!%p598_p5)
}
 0x1b5   :  { %363 = dma.vmem_to_hbm [thread:$0]  %s358_s25, 512, %s852_s7, [#allocation12], %s636_s17, %s636_s17, %s637_s18  }
 0x1b6   :  { %s602_s13 = scalar_lea.vmem %s807_s6, 512  ;;  %p607_p7 = scmp.lt.s32.totalorder %s807_s6, %s807_s6 }
 0x1b7   :  { %p603_p6 = scmp.ne.s32.totalorder %s807_s6, %s602_s13  ;;  %p608_p8 = scmp.lt.s32.totalorder %s602_s13, %s602_s13 }
 0x1b9   :  { %p609_p9 = por %p608_p8, %p607_p7 }
 0x1bb   :  { %p610_p10 = pnand %p609_p9, %p603_p6 }
 0x1bd   :  { %613 = shalt.err (!%p610_p10)
}
 0x1be   :  { %s614_s3 = scalar_lea.hbm %s853_s8, 512 }
 0x1bf   :  { %p615_p11 = scmp.ne.s32.totalorder %s853_s8, %s614_s3  ;;  %p618_p12 = scmp.lt.u32.totalorder %s614_s3, %s853_s8 }
 0x1c1   :  { %p620_p13 = pnand %p618_p12, %p615_p11 }
 0x1c3   :  { %623 = shalt.err (!%p620_p13)
}
 0x1c4   :  { %375 = dma.vmem_to_hbm [thread:$0]  %s807_s6, 512, %s853_s8, [#allocation12], %s636_s17, %s636_s17, %s637_s18  }
 0x1c5   :  { %630 = dma.done.wait [#allocation4], 512  }
 0x1c6   :  { %631 = vsyncadd [#allocation4], 4294966784 }
 0x1c7   :  { %632 = dma.done.wait [#allocation12], 1024  }
 0x1c8   :  { %633 = vsyncadd [#allocation12], 4294966272 }
 0x1c9   :  { %385 = vsyncpa [#allocation3], 1 }
 0x1ca   :  { %386 = vsyncpa [#allocation6], 1 }
 0x1cb   :  { %387 = vsyncpa [#allocation9], 1 }
 0x1cc   :  { %388 = vsyncpa [#allocation4], 1 }
 0x1cd   :  { %389 = vsyncpa [#allocation12], 1 }

</bundles_post_ra>
